<compile_context>
chip_gen: v5e
topology: v5e:2x2
jax: 0.10.0
libtpu: 0.0.40
codegen_flags: <defaults>
</compile_context>

<pallas_src>
import jax
import jax.numpy as jnp
from jax.experimental import pallas as pl
from jax.experimental.pallas import tpu as pltpu


def mlp_kernel(xt_ref, w1_ref, b1_ref, w2_ref, b2_ref, ot_ref):
    # xt_ref: (in_features, tb)      w1_ref: (h_dim, in_features)  b1_ref: (h_dim, 1)
    # w2_ref: (n_classes, h_dim)     b2_ref: (n_classes, 1)        ot_ref: (n_classes, tb)
    # h.T = W1 @ X.T + b1   -> (h_dim, tb), f32 accumulation on the MXU
    h = jnp.dot(w1_ref[...], xt_ref[...], preferred_element_type=jnp.float32)
    h = h + b1_ref[...]
    # LeakyReLU, PyTorch default negative_slope = 0.01
    h = jnp.where(h > 0, h, 0.01 * h)
    # out.T = W2 @ h.T + b2 -> (n_classes, tb)
    out = jnp.dot(w2_ref[...], h, preferred_element_type=jnp.float32)
    out = out + b2_ref[...]
    ot_ref[...] = out.astype(ot_ref.dtype)


def mlp_classifier_forward(x, w1, b1, w2, b2, *, tb=512):
    """x: [B, in_features]; w1: [h_dim, in_features]; b1: [h_dim];
       w2: [n_classes, h_dim]; b2: [n_classes]  (PyTorch Linear param layout)."""
    B, in_features = x.shape
    h_dim = w1.shape[0]
    n_classes = w2.shape[0]
    assert tb % 128 == 0, "batch tile must be a multiple of the 128-lane width"

    # Effective batch tile: a multiple of 128, no bigger than the (128-rounded) batch.
    b_rounded = pl.cdiv(B, 128) * 128
    tb_eff = min(tb, b_rounded)
    Bp = pl.cdiv(B, tb_eff) * tb_eff          # padded batch, divisible by tb_eff

    # Lane-dense activation stream: X.T is (in_features, Bp) with batch on lanes.
    xt = jnp.transpose(x)                      # (in_features, B)
    if Bp != B:
        xt = jnp.pad(xt, ((0, 0), (0, Bp - B)))

    # Biases as columns so they broadcast across the lane (batch) axis.
    b1_2d = b1.reshape(h_dim, 1)
    b2_2d = b2.reshape(n_classes, 1)

    grid = (Bp // tb_eff,)
    out_t = pl.pallas_call(
        mlp_kernel,
        out_shape=jax.ShapeDtypeStruct((n_classes, Bp), x.dtype),
        grid_spec=pltpu.PrefetchScalarGridSpec(
            num_scalar_prefetch=0,
            grid=grid,
            in_specs=[
                pl.BlockSpec((in_features, tb_eff), lambda i: (0, i)),   # X.T tile
                pl.BlockSpec((h_dim, in_features), lambda i: (0, 0)),    # W1 (resident)
                pl.BlockSpec((h_dim, 1), lambda i: (0, 0)),              # b1
                pl.BlockSpec((n_classes, h_dim), lambda i: (0, 0)),      # W2 (resident)
                pl.BlockSpec((n_classes, 1), lambda i: (0, 0)),          # b2
            ],
            out_specs=pl.BlockSpec((n_classes, tb_eff), lambda i: (0, i)),
        ),
        compiler_params=pltpu.CompilerParams(
            dimension_semantics=("parallel",)),
    )(xt, w1, b1_2d, w2, b2_2d)

    # Drop padded batch columns and return in the original [B, n_classes] layout.
    return jnp.transpose(out_t[:, :B])


def reference_forward(x, w1, b1, w2, b2):
    h = x @ w1.T + b1
    h = jnp.where(h > 0, h, 0.01 * h)
    return h @ w2.T + b2


if __name__ == "__main__":
    # Small shapes consistent with MLPClassifier(in_features=32, n_classes=16,
    # h_dim=64, dropout=0.0, nonlinear=True).
    B, in_features, h_dim, n_classes = 16, 32, 64, 16

    key = jax.random.PRNGKey(0)
    kx, k1, kb1, k2, kb2 = jax.random.split(key, 5)

    x = jax.random.normal(kx, (B, in_features), dtype=jnp.float32)

    # Deterministic parameter init (PyTorch-Linear-style uniform bounds).
    bound1 = 1.0 / jnp.sqrt(in_features)
    w1 = jax.random.uniform(k1, (h_dim, in_features), jnp.float32, -bound1, bound1)
    b1 = jax.random.uniform(kb1, (h_dim,), jnp.float32, -bound1, bound1)
    bound2 = 1.0 / jnp.sqrt(h_dim)
    w2 = jax.random.uniform(k2, (n_classes, h_dim), jnp.float32, -bound2, bound2)
    b2 = jax.random.uniform(kb2, (n_classes,), jnp.float32, -bound2, bound2)

    out = mlp_classifier_forward(x, w1, b1, w2, b2)
    out = jax.block_until_ready(out)

    ref = reference_forward(x, w1, b1, w2, b2)
    assert out.shape == (B, n_classes)
    assert jnp.allclose(out, ref, atol=1e-4, rtol=1e-4), "mismatch vs reference"

    print("KERNEL_OK")
</pallas_src>

<mosaic_0001>
module attributes {stable_mosaic.version = 11 : i64} {
  func.func @mlp_kernel(%arg0: i32, %arg1: memref<32x128xf32, #tpu.memory_space<vmem>>, %arg2: memref<64x32xf32, #tpu.memory_space<vmem>>, %arg3: memref<64x1xf32, #tpu.memory_space<vmem>>, %arg4: memref<16x64xf32, #tpu.memory_space<vmem>>, %arg5: memref<16x1xf32, #tpu.memory_space<vmem>>, %arg6: memref<16x128xf32, #tpu.memory_space<vmem>>) attributes {dimension_semantics = [#tpu.dimension_semantics<parallel>], iteration_bounds = array<i64: 1>, scalar_prefetch = 0 : i64, scratch_operands = 0 : i64, tpu.core_type = #tpu.core_type<tc>, window_params = [{transform_indices = @transform_0, window_bounds = array<i64: 32, 128>}, {pipeline_mode = #tpu.pipeline_mode<synchronous>, transform_indices = @transform_1, window_bounds = array<i64: 64, 32>}, {pipeline_mode = #tpu.pipeline_mode<synchronous>, transform_indices = @transform_2, window_bounds = array<i64: 64, 1>}, {pipeline_mode = #tpu.pipeline_mode<synchronous>, transform_indices = @transform_3, window_bounds = array<i64: 16, 64>}, {pipeline_mode = #tpu.pipeline_mode<synchronous>, transform_indices = @transform_4, window_bounds = array<i64: 16, 1>}, {transform_indices = @transform_5, window_bounds = array<i64: 16, 128>}]} {
    %c0 = arith.constant 0 : index
    %c0_0 = arith.constant 0 : index
    %0 = vector.load %arg2[%c0, %c0_0] : memref<64x32xf32, #tpu.memory_space<vmem>>, vector<64x32xf32>
    %c0_1 = arith.constant 0 : index
    %c0_2 = arith.constant 0 : index
    %1 = vector.load %arg1[%c0_1, %c0_2] : memref<32x128xf32, #tpu.memory_space<vmem>>, vector<32x128xf32>
    %cst = arith.constant dense<0.000000e+00> : vector<64x128xf32>
    %2 = tpu.matmul %0, %1, %cst {dimension_numbers = #tpu.dot_dimension_numbers<[1], [0], [0], [1], [0, 0, 1, 1], [], []>} : vector<64x32xf32>, vector<32x128xf32>, vector<64x128xf32> -> vector<64x128xf32>
    %c0_3 = arith.constant 0 : index
    %c0_4 = arith.constant 0 : index
    %3 = vector.load %arg3[%c0_3, %c0_4] : memref<64x1xf32, #tpu.memory_space<vmem>>, vector<64x1xf32>
    %4 = vector.broadcast %3 : vector<64x1xf32> to vector<64x128xf32>
    %5 = arith.addf %2, %4 : vector<64x128xf32>
    %cst_5 = arith.constant 0.000000e+00 : f32
    %6 = vector.broadcast %cst_5 : f32 to vector<64x128xf32>
    %7 = arith.cmpf ogt, %5, %6 : vector<64x128xf32>
    %cst_6 = arith.constant 0.00999999977 : f32
    %8 = vector.broadcast %cst_6 : f32 to vector<64x128xf32>
    %9 = arith.mulf %8, %5 : vector<64x128xf32>
    %10 = arith.select %7, %5, %9 : vector<64x128xi1>, vector<64x128xf32>
    %c0_7 = arith.constant 0 : index
    %c0_8 = arith.constant 0 : index
    %11 = vector.load %arg4[%c0_7, %c0_8] : memref<16x64xf32, #tpu.memory_space<vmem>>, vector<16x64xf32>
    %cst_9 = arith.constant dense<0.000000e+00> : vector<16x128xf32>
    %12 = tpu.matmul %11, %10, %cst_9 {dimension_numbers = #tpu.dot_dimension_numbers<[1], [0], [0], [1], [0, 0, 1, 1], [], []>} : vector<16x64xf32>, vector<64x128xf32>, vector<16x128xf32> -> vector<16x128xf32>
    %c0_10 = arith.constant 0 : index
    %c0_11 = arith.constant 0 : index
    %13 = vector.load %arg5[%c0_10, %c0_11] : memref<16x1xf32, #tpu.memory_space<vmem>>, vector<16x1xf32>
    %14 = vector.broadcast %13 : vector<16x1xf32> to vector<16x128xf32>
    %15 = arith.addf %12, %14 : vector<16x128xf32>
    %c0_12 = arith.constant 0 : index
    %c0_13 = arith.constant 0 : index
    %16 = vector.load %arg6[%c0_12, %c0_13] : memref<16x128xf32, #tpu.memory_space<vmem>>, vector<16x128xf32>
    tpu.vector_store %arg6[%c0_12, %c0_13], %15 {strides = array<i32>} : memref<16x128xf32, #tpu.memory_space<vmem>>, vector<16x128xf32>,
    return
  }
  func.func @transform_0(%arg0: i32) -> (i32, i32) {
    %c0_i32 = arith.constant 0 : i32
    %c0_i32_0 = arith.constant 0 : i32
    return %c0_i32, %arg0 : i32, i32
  }
  func.func @transform_1(%arg0: i32) -> (i32, i32) {
    %c0_i32 = arith.constant 0 : i32
    %c0_i32_0 = arith.constant 0 : i32
    %c0_i32_1 = arith.constant 0 : i32
    return %c0_i32, %c0_i32_0 : i32, i32
  }
  func.func @transform_2(%arg0: i32) -> (i32, i32) {
    %c0_i32 = arith.constant 0 : i32
    %c0_i32_0 = arith.constant 0 : i32
    %c0_i32_1 = arith.constant 0 : i32
    return %c0_i32, %c0_i32_0 : i32, i32
  }
  func.func @transform_3(%arg0: i32) -> (i32, i32) {
    %c0_i32 = arith.constant 0 : i32
    %c0_i32_0 = arith.constant 0 : i32
    %c0_i32_1 = arith.constant 0 : i32
    return %c0_i32, %c0_i32_0 : i32, i32
  }
  func.func @transform_4(%arg0: i32) -> (i32, i32) {
    %c0_i32 = arith.constant 0 : i32
    %c0_i32_0 = arith.constant 0 : i32
    %c0_i32_1 = arith.constant 0 : i32
    return %c0_i32, %c0_i32_0 : i32, i32
  }
  func.func @transform_5(%arg0: i32) -> (i32, i32) {
    %c0_i32 = arith.constant 0 : i32
    %c0_i32_0 = arith.constant 0 : i32
    return %c0_i32, %arg0 : i32, i32
  }
}

</mosaic_0001>

<bundles_post_ra>
// kernel: tpu_custom_call.1
= control target key start
LH: loop header
LB: loop body
LE: loop exit
PB: predicated region body
PF: predicated region fallthrough
CT: control target
= control target key end

     0   :  { %v286_v4 = vmov 0   ;;  %vm81_vm0 = vcmask 261120   ;;  %s403_s0 = inlined_call_operand.vmem [shape: f32[32,128], index: 0, kind: input, shape index: {}]   ;;  %s404_s1 = inlined_call_operand.vmem [shape: f32[64,32], index: 1, kind: input, shape index: {}]   ;;  %s405_s2 = inlined_call_operand.vmem [shape: f32[64,1], index: 2, kind: input, shape index: {}]   ;;  %s406_s3 = inlined_call_operand.vmem [shape: f32[16,64], index: 3, kind: input, shape index: {}]   ;;  %s407_s4 = inlined_call_operand.vmem [shape: f32[16,1], index: 4, kind: input, shape index: {}]   ;;  %s408_s5 = inlined_call_operand.hbm [shape: f32[16,128], index: 5, kind: output, shape index: {}]  }
   0x1   :  { %v32_v0 = vld [vmem:[%s403_s0 + $0x18] sm:$0xff]  ;;  %v31_v1 = vld [vmem:[%s403_s0 + $0x10] sm:$0xff]  ;;  %v30_v3 = vld [vmem:[%s403_s0 + $0x8] sm:$0xff]  ;;  %257 = vset.pattern.permute.xlu0 %v286_v4  ;;  %258 = vset.pattern.permute.xlu1 %v286_v4 }
   0x2   :  { %245 = vmatpush.msra.mxu2 %v32_v0  ;;  %246 = vmatpush.msra.mxu3 %v32_v0  ;;  %v40_v2 = vld [vmem:[%s405_s2 + $0x38] sm:$0xff]  ;;  %v29_v5 = vld [vmem:[%s403_s0] sm:$0xff]  ;;  %v27_v7 = vld [vmem:[%s404_s1 + $0x30] sm:$0xff] }
   0x3   :  { %118 = vmatpush.msra.mxu0 %v32_v0  ;;  %78 = vperm.xlu0 %257, %v40_v2   ;;  %v24_v6 = vld [vmem:[%s404_s1 + $0x18] sm:$0xff]  ;;  %v38_v8 = vld [vmem:[%s405_s2 + $0x28] sm:$0xff]  ;;  %v21_v9 = vld [vmem:[%s404_s1] sm:$0xff] }
   0x4   :  { %247 = vmatpush.msra.mxu2 %v31_v1  ;;  %248 = vmatpush.msra.mxu3 %v31_v1 }
   0x5   :  { %119 = vmatpush.msra.mxu0 %v31_v1 }
   0x6   :  { %249 = vmatpush.msra.mxu2 %v30_v3  ;;  %250 = vmatpush.msra.mxu3 %v30_v3 }
   0x7   :  { %120 = vmatpush.msra.mxu0 %v30_v3 }
   0x8   :  { %251 = vmatpush.msra.mxu2 %v29_v5  ;;  %252 = vmatpush.msra.mxu3 %v29_v5 }
   0x9   :  { %10 = vsyncpa [#allocation3], 0  ;;  %238 = vmatmul.msk.f32.vlgmr.msra.gmra.mxu2 %vm81_vm0, %v24_v6  ;;  %241 = vmatmul.msk.f32.vlgmr.msra.gmra.mxu3 %vm81_vm0, %v27_v7  ;;  %v36_v10 = vld [vmem:[%s405_s2 + $0x18] sm:$0xff]  ;;  %v39_v11 = vld [vmem:[%s405_s2 + $0x30] sm:$0xff]  ;;  %vm185_vm9 = vcmask 523264   ;;  %s287_s11 = smov [#allocation2]  }
   0xa   :  { %121 = vmatpush.msra.mxu0 %v29_v5  ;;  %68 = vperm.xlu1 %258, %v38_v8   ;;  %v25_v12 = vld [vmem:[%s404_s1 + $0x20] sm:$0xff]  ;;  %v28_v13 = vld [vmem:[%s404_s1 + $0x38] sm:$0xff]  ;;  %v22_v15 = vld [vmem:[%s404_s1 + $0x8] sm:$0xff]  ;;  %s221_s12 = sshll.u32 %s287_s11, 4  ;;  %s223_s15 = sshll.u32 %s408_s5, 4  ;;  %s222_s12 = int_to_ptr.vmem [resolvable:$true] %s221_s12  ;;  %s224_s15 = int_to_ptr.hbm [resolvable:$true] %s223_s15 }
   0xb   :  { %235 = vmatmul.msk.f32.vlgmr.msra.gmra.mxu0 %vm81_vm0, %v21_v9  ;;  %259 = vset.pattern.permute.xlu2 %v286_v4  ;;  %v37_v14 = vld [vmem:[%s405_s2 + $0x20] sm:$0xff]  ;;  %v35_v16 = vld [vmem:[%s405_s2 + $0x10] sm:$0xff]  ;;  %v34_v17 = vld [vmem:[%s405_s2 + $0x8] sm:$0xff]  ;;  %s288_s16 = smov 128   ;;  %s289_s17 = smov 8  }
   0xc   :  { %58 = vperm.xlu2 %259, %v36_v10   ;;  %73 = vperm.xlu0 %257, %v39_v11   ;;  %v26_v18 = vld [vmem:[%s404_s1 + $0x28] sm:$0xff]  ;;  %v33_v19 = vld [vmem:[%s405_s2] sm:$0xff]  ;;  %v23_v20 = vld [vmem:[%s404_s1 + $0x10] sm:$0xff] }
   0xd   :  { %v173_v21 = vld [vmem:[%s407_s4] sm:$0xff]  ;;  %v174_v22 = vld [vmem:[%s407_s4 + $0x8] sm:$0xff] }
   0xe   :  { %v171_v62 = vld [vmem:[%s406_s3] sm:$0xff]  ;;  %v172_v0 = vld [vmem:[%s406_s3 + $0x8] sm:$0xff] }
  0x11   :  { %239 = vmatmul.msk.f32.gmra.mxu2 %vm81_vm0, %v25_v12  ;;  %242 = vmatmul.msk.f32.gmra.mxu3 %vm81_vm0, %v28_v13 }
  0x12   :  { %63 = vperm.xlu1 %258, %v37_v14  }
  0x13   :  { %236 = vmatmul.msk.f32.gmra.mxu0 %vm81_vm0, %v22_v15 }
  0x14   :  { %53 = vperm.xlu2 %259, %v35_v16   ;;  %48 = vperm.xlu0 %257, %v34_v17  }
  0x19   :  { %240 = vmatmul.msk.f32.gmra.mxu2 %vm81_vm0, %v26_v18 }
  0x1a   :  { %43 = vperm.xlu1 %258, %v33_v19  }
  0x1b   :  { %237 = vmatmul.msk.f32.gmra.mxu0 %vm81_vm0, %v23_v20 }
  0x1c   :  { %177 = vperm.xlu2 %259, %v173_v21   ;;  %182 = vperm.xlu0 %257, %v174_v22  }
  0x66   :  { %v59_v30 = vpop.permute.xlu2 %58 }
  0x6e   :  { %v54_v45 = vpop.permute.xlu2 %53 }
  0x75   :  { %v79_v23 = vpop.permute.xlu0 %78 }
  0x76   :  { %v178_v1 = vpop.permute.xlu2 %177 }
  0x7c   :  { %v69_v25 = vpop.permute.xlu1 %68 }
  0x7e   :  { %v74_v28 = vpop.permute.xlu0 %73 }
  0x84   :  { %v64_v35 = vpop.permute.xlu1 %63 }
  0x86   :  { %v49_v49 = vpop.permute.xlu0 %48 }
  0x88   :  { %v123_v24 = vpop.f32.mrf.mxu0 }
  0x8c   :  { %v132_v26 = vpop.f32.mrf.mxu2  ;;  %v141_v27 = vpop.f32.mrf.mxu3 }
  0x8d   :  { %v142_v31 = vadd.f32 %v141_v27, %v74_v28  ;;  %v133_v43 = vadd.f32 %v132_v26, %v59_v30  ;;  %v44_v50 = vpop.permute.xlu1 %43 }
  0x8e   :  { %v124_v54 = vadd.f32 %v123_v24, %v44_v50  ;;  %v183_v4 = vpop.permute.xlu0 %182 }
  0x8f   :  { %v161_v37 = vmul.f32 0.01, %v142_v31  ;;  %vm153_vm2 = vcmp.gt.f32.partialorder %v142_v31, 0.0  ;;  %v158_v53 = vmul.f32 0.01, %v133_v43  ;;  %vm150_vm5 = vcmp.gt.f32.partialorder %v133_v43, 0.0 }
  0x90   :  { %v126_v29 = vpop.f32.mrf.mxu0  ;;  %v155_v60 = vmul.f32 0.01, %v124_v54  ;;  %vm147_vm8 = vcmp.gt.f32.partialorder %v124_v54, 0.0 }
  0x91   :  { %v169_v40 = vsel %vm153_vm2, %v142_v31, %v161_v37  ;;  %v127_v51 = vadd.f32 %v126_v29, %v49_v49  ;;  %v166_v57 = vsel %vm150_vm5, %v133_v43, %v158_v53 }
  0x92   :  { %v163_v63 = vsel %vm147_vm8, %v124_v54, %v155_v60 }
  0x93   :  { %v156_v58 = vmul.f32 0.01, %v127_v51  ;;  %vm148_vm7 = vcmp.gt.f32.partialorder %v127_v51, 0.0 }
  0x94   :  { %v135_v32 = vpop.f32.mrf.mxu2  ;;  %v144_v33 = vpop.f32.mrf.mxu3 }
  0x95   :  { %v145_v34 = vadd.f32 %v144_v33, %v79_v23  ;;  %v136_v39 = vadd.f32 %v135_v32, %v64_v35  ;;  %v164_v61 = vsel %vm148_vm7, %v127_v51, %v156_v58 }
  0x97   :  { %vm154_vm1 = vcmp.gt.f32.partialorder %v145_v34, 0.0  ;;  %v162_v36 = vmul.f32 0.01, %v145_v34  ;;  %v159_v48 = vmul.f32 0.01, %v136_v39  ;;  %vm151_vm4 = vcmp.gt.f32.partialorder %v136_v39, 0.0 }
  0x98   :  { %v129_v41 = vpop.f32.mrf.mxu0 }
  0x99   :  { %v170_v38 = vsel %vm154_vm1, %v145_v34, %v162_v36  ;;  %v130_v46 = vadd.f32 %v129_v41, %v54_v45  ;;  %v167_v55 = vsel %vm151_vm4, %v136_v39, %v159_v48 }
  0x9a   :  { %200 = vmatpush.msra.mxu1 %v170_v38 }
  0x9b   :  { %v157_v56 = vmul.f32 0.01, %v130_v46  ;;  %vm149_vm6 = vcmp.gt.f32.partialorder %v130_v46, 0.0 }
  0x9c   :  { %v138_v42 = vpop.f32.mrf.mxu2  ;;  %201 = vmatpush.msra.mxu1 %v169_v40 }
  0x9d   :  { %v139_v44 = vadd.f32 %v138_v42, %v69_v25  ;;  %v165_v59 = vsel %vm149_vm6, %v130_v46, %v157_v56 }
  0x9f   :  { %vm152_vm3 = vcmp.gt.f32.partialorder %v139_v44, 0.0  ;;  %v160_v47 = vmul.f32 0.01, %v139_v44 }
  0xa1   :  { %v168_v52 = vsel %vm152_vm3, %v139_v44, %v160_v47 }
  0xa2   :  { %202 = vmatpush.msra.mxu1 %v168_v52 }
  0xa4   :  { %203 = vmatpush.msra.mxu1 %v167_v55 }
  0xa6   :  { %204 = vmatpush.msra.mxu1 %v166_v57 }
  0xa8   :  { %205 = vmatpush.msra.mxu1 %v165_v59 }
  0xaa   :  { %206 = vmatpush.msra.mxu1 %v164_v61 }
  0xac   :  { %207 = vmatpush.msra.mxu1 %v163_v63 }
  0xad   :  { %243 = vmatmul.msk.f32.vlgmr.msra.gmra.mxu1 %vm185_vm9, %v171_v62 }
  0xb5   :  { %244 = vmatmul.msk.f32.gmra.mxu1 %vm185_vm9, %v172_v0 }
 0x12a   :  { %v209_v2 = vpop.f32.mrf.mxu1 }
 0x12b   :  { %v210_v3 = vadd.f32 %v209_v2, %v178_v1 }
 0x12d   :  { %215 = vst [vmem:[#allocation2] sm:$0xff] %v210_v3 }
 0x132   :  { %v212_v5 = vpop.f32.mrf.mxu1 }
 0x133   :  { %v213_v6 = vadd.f32 %v212_v5, %v183_v4 }
 0x135   :  { %216 = vst [vmem:[#allocation2 + $0x8] sm:$0xff] %v213_v6 }
 0x136   :  { %229 = dma.vmem_to_hbm [thread:$0]  %s222_s12, 256, %s224_s15, [#allocation3], %s288_s16, %s288_s16, %s289_s17  }
 0x137   :  { %284 = dma.done.wait [#allocation3], 256  }
 0x138   :  { %285 = vsyncadd [#allocation3], 4294967040 }
 0x139   :  { %234 = vsyncpa [#allocation3], 1 }

</bundles_post_ra>
